<compile_context>
chip_gen: v5e
topology: v5e:2x2
jax: 0.10.0
libtpu: 0.0.40
codegen_flags: <defaults>
</compile_context>

<pallas_src>
import functools
import math

import jax
import jax.numpy as jnp
from jax.experimental import pallas as pl
from jax.experimental.pallas import tpu as pltpu


# ---------------------------------------------------------------------------
# Kernels
# ---------------------------------------------------------------------------

def _norm_matmul_kernel(x_ref, g_ref, w_ref, o_ref, *, eps):
    """o = (rmsnorm(x) * g) @ W for one token tile.  W is (in, out)-layout."""
    xf = x_ref[...].astype(jnp.float32)
    var = jnp.mean(xf * xf, axis=-1, keepdims=True)
    xn = xf * jax.lax.rsqrt(var + eps) * g_ref[...].astype(jnp.float32)
    xn = xn.astype(w_ref.dtype)          # feed MXU in the weight's native dtype
    o_ref[...] = jnp.dot(xn, w_ref[...],
                         preferred_element_type=jnp.float32).astype(o_ref.dtype)


def _attn_kernel(q_ref, k_ref, v_ref, cos_ref, sin_ref, o_ref, *, scale):
    """RoPE + causal softmax attention for one (batch, q_head).

    q/k tiles arrive with a per-head column permutation (even pair elements
    first, odd pair elements second), so the PyTorch interleaved-complex rotary
    becomes lane-friendly `x*cos + rotate_half(x)*sin`.  The permutation is
    applied consistently to q and k, so q.k (and the attention output over the
    unpermuted v) is unchanged.
    """
    cos = cos_ref[...].astype(jnp.float32)       # (S, hd) de-interleaved tables
    sin = sin_ref[...].astype(jnp.float32)

    def rope(x):                                  # x: (S, hd) f32
        half = x.shape[-1] // 2
        xr = jnp.concatenate([-x[:, half:], x[:, :half]], axis=-1)
        return x * cos + xr * sin

    q = rope(q_ref[...].astype(jnp.float32)).astype(q_ref.dtype)
    k = rope(k_ref[...].astype(jnp.float32)).astype(k_ref.dtype)

    # (S, S) scores; contract head_dim of both operands (no in-kernel transpose).
    s = jax.lax.dot_general(q, k, (((1,), (1,)), ((), ())),
                            preferred_element_type=jnp.float32) * scale
    row = jax.lax.broadcasted_iota(jnp.int32, s.shape, 0)
    col = jax.lax.broadcasted_iota(jnp.int32, s.shape, 1)
    s = jnp.where(col <= row, s, -1e30)           # causal mask
    s = s - jnp.max(s, axis=-1, keepdims=True)
    p = jnp.exp(s)
    p = p / jnp.sum(p, axis=-1, keepdims=True)
    # TODO(synk): attn_dropout is identity here (eval mode / dropout = 0.0).
    o = jnp.dot(p.astype(v_ref.dtype), v_ref[...],
                preferred_element_type=jnp.float32)
    o_ref[...] = o.astype(o_ref.dtype)


def _oproj_ffn_kernel(a_ref, x_ref, g_ref, wo_ref, w13_ref, w2_ref, o_ref, *,
                      eps, hidden_dim):
    """o = h + W2(silu(W1 hn) * W3 hn) with h = x + attn @ Wo, hn = rmsnorm(h)*g.

    Fully fused per token tile: the intermediate h never leaves VMEM.
    W1|W3 are fused into one (D, 2H) RHS.
    """
    y = jnp.dot(a_ref[...], wo_ref[...], preferred_element_type=jnp.float32)
    # TODO(synk): resid_dropout is identity here (eval mode / dropout = 0.0).
    h = x_ref[...].astype(jnp.float32) + y                    # first residual
    var = jnp.mean(h * h, axis=-1, keepdims=True)
    hn = (h * jax.lax.rsqrt(var + eps) * g_ref[...].astype(jnp.float32)
          ).astype(w13_ref.dtype)
    h13 = jnp.dot(hn, w13_ref[...], preferred_element_type=jnp.float32)  # (tm, 2H)
    h1 = h13[:, :hidden_dim]
    h3 = h13[:, hidden_dim:]
    gated = (h1 * jax.nn.sigmoid(h1) * h3).astype(w2_ref.dtype)
    out = jnp.dot(gated, w2_ref[...], preferred_element_type=jnp.float32)
    # TODO(synk): ffn dropout is identity here (eval mode / dropout = 0.0).
    o_ref[...] = (h + out).astype(o_ref.dtype)                # second residual


# ---------------------------------------------------------------------------
# Wrapper
# ---------------------------------------------------------------------------

def _compiler_params(block_shapes, itemsize, dims):
    blk_bytes = sum(math.prod(s) for s in block_shapes) * itemsize
    limit = int(min(2 * blk_bytes + (8 << 20), 48 << 20))  # dbl-buffer + headroom
    return pltpu.CompilerParams(dimension_semantics=dims, vmem_limit_bytes=limit)


def _auto_tm(m, target=256):
    if m <= 8 or m % 8:
        return m                       # full-extent block is always legal
    tm = min(target, m) // 8 * 8
    while m % tm:
        tm -= 8
    return tm


def prepare_decoder_params(params, *, n_heads, n_kv_heads, head_dim):
    """One-time parameter prep (NOT per forward): fuse Q|K|V and W1|W3, transpose
    to (in, out) layout, and de-interleave q/k head_dim rows so the kernel's
    rotate-half RoPE matches the PyTorch interleaved-complex rotary exactly."""
    hd = head_dim
    perm = jnp.concatenate([jnp.arange(0, hd, 2), jnp.arange(1, hd, 2)])

    def deinterleave(w, nh):                     # w: (nh*hd, D), PyTorch layout
        return w.reshape(nh, hd, -1)[:, perm, :].reshape(nh * hd, -1)

    wq = deinterleave(params["wq"], n_heads)
    wk = deinterleave(params["wk"], n_kv_heads)
    return {
        "attn_norm_g": params["attention_norm"].reshape(1, -1),
        "ffn_norm_g": params["ffn_norm"].reshape(1, -1),
        "wqkv_t": jnp.concatenate([wq, wk, params["wv"]], axis=0).T,      # (D, Nqkv)
        "wo_t": params["wo"].T,                                           # (Hq*hd, D)
        "w13_t": jnp.concatenate([params["w1"], params["w3"]], axis=0).T,  # (D, 2H)
        "w2_t": params["w2"].T,                                           # (H, D)
    }


def decoder_layer_forward(x, cos_half, sin_half, p, *, n_heads, n_kv_heads,
                          head_dim, hidden_dim, eps=1e-6, tm=None):
    """Pallas forward of DecoderLayer (eval mode, no KV cache).

    x: (B, S, D); cos_half/sin_half: (S, head_dim//2) rotary tables (pos_cis
    real/imag parts); p: output of prepare_decoder_params.
    """
    B, S, D = x.shape
    M = B * S
    Hq, Hkv, hd = n_heads, n_kv_heads, head_dim
    n_rep = Hq // Hkv
    Nqkv = (Hq + 2 * Hkv) * hd
    itemsize = jnp.dtype(x.dtype).itemsize

    if tm is None:
        tm = _auto_tm(M)
    assert M % tm == 0 and (tm == M or tm % 8 == 0), (M, tm)
    assert S == M or S % 8 == 0, f"S={S} must be a multiple of 8 (or B == 1)"
    assert hd % 128 == 0, (
        f"head_dim={hd} must be lane-aligned for the fused 2-D attention layout")
    n_tok = M // tm
    x2d = x.reshape(M, D)

    # ---- RMSNorm + fused QKV projection ----------------------------------
    qkv2d = pl.pallas_call(
        functools.partial(_norm_matmul_kernel, eps=eps),
        out_shape=jax.ShapeDtypeStruct((M, Nqkv), x.dtype),
        grid_spec=pltpu.PrefetchScalarGridSpec(
            num_scalar_prefetch=0, grid=(n_tok,),
            in_specs=[
                pl.BlockSpec((tm, D), lambda i: (i, 0)),
                pl.BlockSpec((1, D), lambda i: (0, 0)),
                pl.BlockSpec((D, Nqkv), lambda i: (0, 0)),
            ],
            out_specs=pl.BlockSpec((tm, Nqkv), lambda i: (i, 0))),
        compiler_params=_compiler_params(
            [(tm, D), (1, D), (D, Nqkv), (tm, Nqkv)], itemsize, ("parallel",)),
    )(x2d, p["attn_norm_g"], p["wqkv_t"])

    # De-interleaved rotary tables, (S, hd).
    cos_de = jnp.concatenate([cos_half, cos_half], axis=-1)
    sin_de = jnp.concatenate([sin_half, sin_half], axis=-1)

    # ---- RoPE + causal attention (GQA via column index_map) ---------------
    # q/k/v head tiles are sliced straight out of the (M, Nqkv) projection
    # buffer (rows = batch block, cols = head block); output is written in the
    # (M, Hq*hd) layout the o-projection consumes -> no XLA transposes at all.
    attn2d = pl.pallas_call(
        functools.partial(_attn_kernel, scale=1.0 / math.sqrt(hd)),
        out_shape=jax.ShapeDtypeStruct((M, Hq * hd), x.dtype),
        grid_spec=pltpu.PrefetchScalarGridSpec(
            num_scalar_prefetch=0, grid=(B, Hq),
            in_specs=[
                pl.BlockSpec((S, hd), lambda b, h: (b, h)),
                pl.BlockSpec((S, hd), lambda b, h: (b, Hq + h // n_rep)),
                pl.BlockSpec((S, hd), lambda b, h: (b, Hq + Hkv + h // n_rep)),
                pl.BlockSpec((S, hd), lambda b, h: (0, 0)),
                pl.BlockSpec((S, hd), lambda b, h: (0, 0)),
            ],
            out_specs=pl.BlockSpec((S, hd), lambda b, h: (b, h))),
        compiler_params=_compiler_params(
            [(S, hd)] * 6, itemsize, ("parallel", "parallel")),
    )(qkv2d, qkv2d, qkv2d, cos_de, sin_de)

    # ---- O-proj + residual + FFN RMSNorm + SwiGLU FFN + residual (fused) ---
    out2d = pl.pallas_call(
        functools.partial(_oproj_ffn_kernel, eps=eps, hidden_dim=hidden_dim),
        out_shape=jax.ShapeDtypeStruct((M, D), x.dtype),
        grid_spec=pltpu.PrefetchScalarGridSpec(
            num_scalar_prefetch=0, grid=(n_tok,),
            in_specs=[
                pl.BlockSpec((tm, Hq * hd), lambda i: (i, 0)),
                pl.BlockSpec((tm, D), lambda i: (i, 0)),
                pl.BlockSpec((1, D), lambda i: (0, 0)),
                pl.BlockSpec((Hq * hd, D), lambda i: (0, 0)),
                pl.BlockSpec((D, 2 * hidden_dim), lambda i: (0, 0)),
                pl.BlockSpec((hidden_dim, D), lambda i: (0, 0)),
            ],
            out_specs=pl.BlockSpec((tm, D), lambda i: (i, 0))),
        compiler_params=_compiler_params(
            [(tm, Hq * hd), (tm, D), (1, D), (Hq * hd, D),
             (D, 2 * hidden_dim), (hidden_dim, D), (tm, D)],
            itemsize, ("parallel",)),
    )(attn2d, x2d, p["ffn_norm_g"], p["wo_t"], p["w13_t"], p["w2_t"])

    # TODO(synk): KV cache (past_key_value / use_cache) path not implemented;
    # this mirrors the no-cache forward and returns past_kv=None.
    return out2d.reshape(B, S, D), None


# ---------------------------------------------------------------------------
# Pure-JAX reference (mirrors the PyTorch module exactly)
# ---------------------------------------------------------------------------

def _rmsnorm_ref(x, w, eps):
    xf = x.astype(jnp.float32)
    var = jnp.mean(xf * xf, axis=-1, keepdims=True)
    return w * (xf * jax.lax.rsqrt(var + eps))


def _rotary_ref(x, cos_half, sin_half):
    # PyTorch apply_rotary_emb: interleaved pairs treated as complex numbers.
    xf = x.astype(jnp.float32).reshape(*x.shape[:-1], -1, 2)
    xe, xo = xf[..., 0], xf[..., 1]
    c = cos_half[None, :, None, :]
    s = sin_half[None, :, None, :]
    oe = xe * c - xo * s
    oo = xe * s + xo * c
    return jnp.stack([oe, oo], axis=-1).reshape(x.shape).astype(x.dtype)


def decoder_layer_ref(x, params, cos_half, sin_half, *, n_heads, n_kv_heads,
                      head_dim, eps):
    B, S, _ = x.shape
    hd = head_dim
    n_rep = n_heads // n_kv_heads

    hn = _rmsnorm_ref(x, params["attention_norm"], eps)
    q = (hn @ params["wq"].T).reshape(B, S, n_heads, hd)
    k = (hn @ params["wk"].T).reshape(B, S, n_kv_heads, hd)
    v = (hn @ params["wv"].T).reshape(B, S, n_kv_heads, hd)
    q = _rotary_ref(q, cos_half, sin_half)
    k = _rotary_ref(k, cos_half, sin_half)
    k = jnp.repeat(k, n_rep, axis=2)          # repeat_kv (repeat_interleave)
    v = jnp.repeat(v, n_rep, axis=2)
    q, k, v = (t.transpose(0, 2, 1, 3) for t in (q, k, v))
    scores = (q @ k.transpose(0, 1, 3, 2)) / math.sqrt(hd)
    mask = jnp.triu(jnp.full((S, S), -jnp.inf, dtype=jnp.float32), k=1)
    scores = scores + mask[None, None]
    p = jax.nn.softmax(scores.astype(jnp.float32), axis=-1).astype(q.dtype)
    o = (p @ v).transpose(0, 2, 1, 3).reshape(B, S, n_heads * hd)
    h = x + o @ params["wo"].T
    hn2 = _rmsnorm_ref(h, params["ffn_norm"], eps)
    h1 = hn2 @ params["w1"].T
    h3 = hn2 @ params["w3"].T
    return h + (h1 * jax.nn.sigmoid(h1) * h3) @ params["w2"].T


# ---------------------------------------------------------------------------
# Demo
# ---------------------------------------------------------------------------

if __name__ == "__main__":
    batch, seq = 2, 8
    dim = 256
    n_heads, n_kv_heads = 2, 1            # GQA with n_rep = 2
    head_dim = dim // n_heads             # 128 (lane-dense)
    multiple_of = 128
    hidden_dim = 4 * dim
    hidden_dim = int(2 * hidden_dim / 3)
    hidden_dim = multiple_of * ((hidden_dim + multiple_of - 1) // multiple_of)  # 768
    eps = 1e-6

    key = jax.random.PRNGKey(0)
    ks = jax.random.split(key, 10)
    x = jax.random.normal(ks[0], (batch, seq, dim), dtype=jnp.float32)

    def lin(k, out_f, in_f):              # nn.Linear(in_f, out_f, bias=False).weight
        return jax.random.normal(k, (out_f, in_f), dtype=jnp.float32) * 0.02

    params = {
        "wq": lin(ks[1], n_heads * head_dim, dim),
        "wk": lin(ks[2], n_kv_heads * head_dim, dim),
        "wv": lin(ks[3], n_kv_heads * head_dim, dim),
        "wo": lin(ks[4], dim, n_heads * head_dim),
        "w1": lin(ks[5], hidden_dim, dim),
        "w2": lin(ks[6], dim, hidden_dim),
        "w3": lin(ks[7], hidden_dim, dim),
        "attention_norm": 1.0 + 0.1 * jax.random.normal(ks[8], (dim,), dtype=jnp.float32),
        "ffn_norm": 1.0 + 0.1 * jax.random.normal(ks[9], (dim,), dtype=jnp.float32),
    }

    # pos_cis rotary tables (interleaved-pair / complex convention).
    freqs = 1.0 / (10000.0 ** (jnp.arange(0, head_dim, 2, dtype=jnp.float32) / head_dim))
    ang = jnp.outer(jnp.arange(seq, dtype=jnp.float32), freqs)   # (S, hd/2)
    cos_half, sin_half = jnp.cos(ang), jnp.sin(ang)

    prepared = prepare_decoder_params(
        params, n_heads=n_heads, n_kv_heads=n_kv_heads, head_dim=head_dim)

    out, _ = decoder_layer_forward(
        x, cos_half, sin_half, prepared,
        n_heads=n_heads, n_kv_heads=n_kv_heads, head_dim=head_dim,
        hidden_dim=hidden_dim, eps=eps, tm=8)    # tm=8 -> 2-step pipelined token grid
    out = jax.block_until_ready(out)

    ref = decoder_layer_ref(x, params, cos_half, sin_half,
                            n_heads=n_heads, n_kv_heads=n_kv_heads,
                            head_dim=head_dim, eps=eps)
    assert out.shape == (batch, seq, dim)
    max_err = jnp.max(jnp.abs(out - ref))
    assert jnp.allclose(out, ref, atol=1e-4, rtol=1e-4), f"max abs err = {max_err}"

    print("KERNEL_OK")
</pallas_src>

<mosaic_0001>
module attributes {stable_mosaic.version = 11 : i64} {
  func.func @_norm_matmul_kernel(%arg0: i32, %arg1: memref<8x256xf32, #tpu.memory_space<vmem>>, %arg2: memref<1x256xf32, #tpu.memory_space<vmem>>, %arg3: memref<256x512xf32, #tpu.memory_space<vmem>>, %arg4: memref<8x512xf32, #tpu.memory_space<vmem>>) attributes {dimension_semantics = [#tpu.dimension_semantics<parallel>], iteration_bounds = array<i64: 2>, scalar_prefetch = 0 : i64, scratch_operands = 0 : i64, tpu.core_type = #tpu.core_type<tc>, window_params = [{transform_indices = @transform_0, window_bounds = array<i64: 8, 256>}, {pipeline_mode = #tpu.pipeline_mode<synchronous>, transform_indices = @transform_1, window_bounds = array<i64: 1, 256>}, {pipeline_mode = #tpu.pipeline_mode<synchronous>, transform_indices = @transform_2, window_bounds = array<i64: 256, 512>}, {transform_indices = @transform_3, window_bounds = array<i64: 8, 512>}]} {
    %c0 = arith.constant 0 : index
    %c0_0 = arith.constant 0 : index
    %0 = vector.load %arg1[%c0, %c0_0] : memref<8x256xf32, #tpu.memory_space<vmem>>, vector<8x256xf32>
    %1 = arith.mulf %0, %0 : vector<8x256xf32>
    %cst = arith.constant dense<0.000000e+00> : vector<8xf32>
    %2 = vector.multi_reduction <add>, %1, %cst [1] : vector<8x256xf32> to vector<8xf32>
    %3 = vector.shape_cast %2 : vector<8xf32> to vector<8x1xf32>
    %cst_1 = arith.constant 2.560000e+02 : f32
    %4 = vector.broadcast %cst_1 : f32 to vector<8x1xf32>
    %5 = arith.divf %3, %4 : vector<8x1xf32>
    %cst_2 = arith.constant 9.99999997E-7 : f32
    %6 = vector.broadcast %cst_2 : f32 to vector<8x1xf32>
    %7 = arith.addf %5, %6 : vector<8x1xf32>
    %8 = math.rsqrt %7 : vector<8x1xf32>
    %9 = vector.broadcast %8 : vector<8x1xf32> to vector<8x256xf32>
    %10 = arith.mulf %0, %9 : vector<8x256xf32>
    %c0_3 = arith.constant 0 : index
    %c0_4 = arith.constant 0 : index
    %11 = vector.load %arg2[%c0_3, %c0_4] : memref<1x256xf32, #tpu.memory_space<vmem>>, vector<1x256xf32>
    %12 = vector.broadcast %11 : vector<1x256xf32> to vector<8x256xf32>
    %13 = arith.mulf %10, %12 : vector<8x256xf32>
    %c0_5 = arith.constant 0 : index
    %c0_6 = arith.constant 0 : index
    %14 = vector.load %arg3[%c0_5, %c0_6] : memref<256x512xf32, #tpu.memory_space<vmem>>, vector<256x512xf32>
    %cst_7 = arith.constant dense<0.000000e+00> : vector<8x512xf32>
    %15 = tpu.matmul %13, %14, %cst_7 {dimension_numbers = #tpu.dot_dimension_numbers<[1], [0], [0], [1], [0, 0, 1, 1], [], []>} : vector<8x256xf32>, vector<256x512xf32>, vector<8x512xf32> -> vector<8x512xf32>
    %c0_8 = arith.constant 0 : index
    %c0_9 = arith.constant 0 : index
    %16 = vector.load %arg4[%c0_8, %c0_9] : memref<8x512xf32, #tpu.memory_space<vmem>>, vector<8x512xf32>
    tpu.vector_store %arg4[%c0_8, %c0_9], %15 {strides = array<i32>} : memref<8x512xf32, #tpu.memory_space<vmem>>, vector<8x512xf32>,
    return
  }
  func.func @transform_0(%arg0: i32) -> (i32, i32) {
    %c0_i32 = arith.constant 0 : i32
    %c0_i32_0 = arith.constant 0 : i32
    return %arg0, %c0_i32 : i32, i32
  }
  func.func @transform_1(%arg0: i32) -> (i32, i32) {
    %c0_i32 = arith.constant 0 : i32
    %c0_i32_0 = arith.constant 0 : i32
    %c0_i32_1 = arith.constant 0 : i32
    return %c0_i32, %c0_i32_0 : i32, i32
  }
  func.func @transform_2(%arg0: i32) -> (i32, i32) {
    %c0_i32 = arith.constant 0 : i32
    %c0_i32_0 = arith.constant 0 : i32
    %c0_i32_1 = arith.constant 0 : i32
    return %c0_i32, %c0_i32_0 : i32, i32
  }
  func.func @transform_3(%arg0: i32) -> (i32, i32) {
    %c0_i32 = arith.constant 0 : i32
    %c0_i32_0 = arith.constant 0 : i32
    return %arg0, %c0_i32 : i32, i32
  }
}

</mosaic_0001>

<bundles_post_ra>
// kernel: tpu_custom_call.1
= control target key start
LH: loop header
LB: loop body
LE: loop exit
PB: predicated region body
PF: predicated region fallthrough
CT: control target
= control target key end

     0   :  { %8 = vsyncpa [#allocation3], 0  ;;  %s1094_s0 = inlined_call_operand.hbm [shape: f32[16,256], index: 0, kind: input, shape index: {}]   ;;  %s1095_s1 = inlined_call_operand.hbm [shape: f32[1,256], index: 1, kind: input, shape index: {}]   ;;  %s1096_s2 = inlined_call_operand.hbm [shape: f32[256,512], index: 2, kind: input, shape index: {}]   ;;  %s1097_s3 = inlined_call_operand.hbm [shape: f32[16,512], index: 3, kind: output, shape index: {}]  }
   0x1   :  { %10 = vsyncpa [#allocation3 + $0x1], 0 }
   0x2   :  { %11 = vsyncpa [#allocation6], 0 }
   0x3   :  { %12 = vsyncpa [#allocation4], 0 }
   0x4   :  { %14 = vsyncpa [#allocation4 + $0x1], 0  ;;  %s935_s12 = smov 0   ;;  %s937_s13 = smov 0  }
   0x5   :  { %s939_s14 = smov 0   ;;  %s941_s15 = smov 0  }
   0x6 LB: > { %s956_s16 = sadd.s32 4294967295, %s908_s15   ;;  %s654_s17 = sadd.s32 4294967294, %s908_s15   ;;  %s908_s15 = sphi %s941_s15, %s1107_s15   ;;  %s904_s14 = sphi %s939_s14, %s1106_s14   ;;  %s900_s13 = sphi %s937_s13, %s1105_s13   ;;  %s896_s12 = sphi %s935_s12, %s1104_s12  }
   0x7   : > { %p40_p0 = scmp.ne.s32.totalorder %s900_s13, %s896_s12  ;;  %p41_p1 = scmp.eq.s32.totalorder %s956_s16, 0 }
   0x8   : > { %p106_p2 = scmp.eq.s32.totalorder %s956_s16, 1  ;;  %p112_p3 = scmp.eq.s32.totalorder %s654_s17, 1 }
   0x9   : > { %p965_p4 = por %p41_p1, %p40_p0  ;;  %p655_p5 = scmp.ge.s32.totalorder %s908_s15, 1 }
   0xa   : > { %p970_p6 = por %p112_p3, %p40_p0  ;;  %p119_p7 = scmp.lt.s32.totalorder %s908_s15, 3 }
   0xb   : > { %s131_s22 = sshll.u32 %s1095_s1, 4  ;;  %s910_s24 = smov [#allocation5]   ;;  %s132_s22 = int_to_ptr.hbm [resolvable:$true] %s131_s22 }
   0xc   : > { %p978_p8 = pnand %p655_p5, %p119_p7  ;;  %s133_s25 = sshll.u32 %s910_s24, 4  ;;  %s134_s25 = int_to_ptr.vmem [resolvable:$true] %s133_s25 }
   0xd   : > { %s142_s28 = sshll.u32 %s1096_s2, 4  ;;  %s911_s29 = smov [#allocation7]   ;;  %s143_s28 = int_to_ptr.hbm [resolvable:$true] %s142_s28 }
   0xe   : > { %p686_p10 = pneg %p978_p8  ;;  %s144_s30 = sshll.u32 %s911_s29, 4  ;;  %s145_s30 = int_to_ptr.vmem [resolvable:$true] %s144_s30 }
   0xf   : > { %s912_s4 = smov 512   ;;  %s913_s5 = smov 32  }
  0x10   : > { %p687_p11 = pnand %p686_p10, %p41_p1  ;;  %s991_s6 = sadd.s32 1, %s908_s15  }
  0x11   : > { %s24_s7 = ssub.s32 %s908_s15, %s991_s6  ;;  %s27_s8 = sadd.s32 1, %s904_s14 }
  0x12   : > { %689 = dma.hbm_to_vmem [thread:$0]  (!%p687_p11), %s132_s22, 32, %s134_s25, [#allocation6]  }
  0x13   : > { %692 = dma.hbm_to_vmem [thread:$0]  (!%p687_p11), %s143_s28, 16384, %s145_s30, [#allocation6], %s912_s4, %s912_s4, %s913_s5  }
  0x14   : > { %p25_p12 = scmp.eq.s32.totalorder %s24_s7, 0  ;;  %p34_p13 = scmp.ne.s32.totalorder %s904_s14, %s900_s13 }
  0x15   : > { %p35_p0 = scmp.eq.s32.totalorder %s908_s15, 0  ;;  %p703_p7 = scmp.lt.s32.totalorder %s908_s15, 2 }
  0x16   : > { %s1000_s9 = scalar_select %p25_p12, %s904_s14, %s27_s8  }
  0x17   : > { %p36_p3 = por %p35_p0, %p34_p13  ;;  %p1004_p5 = por %p106_p2, %p34_p13 }
  0x18   : > { %s158_s11 = sand.u32 1, %s904_s14   ;;  %s672_s20 = sshll.u32 %s908_s15, 4 }
  0x19   : > { %s659_s17 = sshll.u32 %s158_s11, 4  ;;  %s167_s24 = scalar_lea.hbm %s1094_s0, %s672_s20 }
  0x1a   : > { %s162_s25 = scalar_lea.vmem [#allocation2], %s659_s17  ;;  %s169_s27 = sshll.u32 %s167_s24, 4  ;;  %s170_s27 = int_to_ptr.hbm [resolvable:$true] %s169_s27 }
  0x1b   : > { %s171_s26 = sshll.u32 %s162_s25, 4  ;;  %p1014_p10 = pnand %p703_p7, %p36_p3  ;;  %s172_s26 = int_to_ptr.vmem [resolvable:$true] %s171_s26 }
  0x1c   : > { %s159_s29 = scalar_lea.sflag [#allocation3], %s158_s11  ;;  %s808_s30 = sshra.s32 %s170_s27, 4  ;;  %s809_s30 = int_to_ptr.hbm [resolvable:$true] %s808_s30 }
  0x1d   : > { %s810_s4 = scalar_lea.hbm %s809_s30, 16  ;;  %p812_p11 = pneg %p1014_p10 }
  0x1e   : > { %p811_p2 = scmp.ne.s32.totalorder %s809_s30, %s810_s4  ;;  %s815_s8 = scalar_lea.hbm %s1094_s0, 32 }
  0x1f   : > { %p816_p0 = scmp.lt.s32.totalorder %s809_s30, %s1094_s0  ;;  %p817_p3 = scmp.lt.s32.totalorder %s815_s8, %s810_s4 }
  0x20   : > { %p813_p12 = pnand %p812_p11, %p811_p2 }
  0x21   : > { %p818_p7 = por %p817_p3, %p816_p0 }
  0x22   : > { %p814_p13 = pneg %p813_p12 }
  0x24   : > { %p819_p9 = pnand %p818_p7, %p814_p13 }
  0x26   : > { %822 = shalt.err (!%p819_p9)
}
  0x27   : > { %696 = dma.hbm_to_vmem [thread:$0]  (!%p1014_p10), %s170_s27, 256, %s172_s26, %s159_s29  }
  0x28   : > { %180 = sbr.rel (%p978_p8) target bundleno = 341 (0x155), region = 32  ;;  %s1031_s11 = sand.u32 (!%p978_p8), 1, %s900_s13  }
  0x29   : > { %s663_s21 = sshll.u32 (!%p978_p8), %s1031_s11, 4  ;;  %s183_s22 = scalar_lea.sflag (!%p978_p8), [#allocation3], %s1031_s11 }
  0x2a   : > { %s186_s24 = scalar_lea.vmem (!%p978_p8), [#allocation2], %s663_s21 }
  0x2d   : > { %883 = dma.done.wait (%p965_p4), %s183_s22, 256  }
  0x2e   : > { %885 = vsyncadd (%p965_p4), %s183_s22, 4294967040 }
  0x2f   : > { %887 = dma.done.wait (%p41_p1), [#allocation6], 16416  }
  0x30   : > { %889 = vsyncadd (%p41_p1), [#allocation6], 4294950880  ;;  %v1043_v0 = vld [vmem:[%s186_s24] sm:$0xff]  ;;  %v1045_v1 = vld [vmem:[%s186_s24 + $0x8] sm:$0xff]  ;;  %s666_s18 = sshll.u32 %s1031_s11, 5  ;;  %s673_s25 = sshll.u32 %s956_s16, 5 }
  0x31   : > { %v316_v2 = vld [vmem:[#allocation7 + $0x1e0] sm:$0xff]  ;;  %v222_v3 = vmul.f32 %v1043_v0, %v1043_v0  ;;  %v223_v4 = vmul.f32 %v1045_v1, %v1045_v1  ;;  %v317_v6 = vld [vmem:[#allocation7 + $0x1e8] sm:$0xff]  ;;  %s219_s23 = scalar_lea.vmem [#allocation8], %s666_s18  ;;  %s560_s28 = scalar_lea.hbm %s1097_s3, %s673_s25 }
  0x32   : > { %384 = vmatpush.msra.mxu0 %v316_v2  ;;  %v380_v5 = vld [vmem:[#allocation7 + $0x3e0] sm:$0xff]  ;;  %v381_v7 = vld [vmem:[#allocation7 + $0x3e8] sm:$0xff]  ;;  %424 = vmatpush.msra.mxu2 %v317_v6  ;;  %s562_s29 = sshll.u32 %s219_s23, 4  ;;  %s564_s30 = sshll.u32 %s560_s28, 4  ;;  %s563_s29 = int_to_ptr.vmem [resolvable:$true] %s562_s29  ;;  %s565_s30 = int_to_ptr.hbm [resolvable:$true] %s564_s30 }
  0x33   : > { %404 = vmatpush.msra.mxu1 %v380_v5  ;;  %v312_v8 = vld [vmem:[#allocation7 + $0x1c0] sm:$0xff]  ;;  %v313_v10 = vld [vmem:[#allocation7 + $0x1c8] sm:$0xff]  ;;  %v224_v11 = vadd.f32 %v223_v4, %v222_v3  ;;  %444 = vmatpush.msra.mxu3 %v381_v7  ;;  %v318_v7 = vld [vmem:[#allocation7 + $0x1f0] sm:$0xff]  ;;  %s549_s16 = scalar_lea.sflag [#allocation4], %s1031_s11  ;;  %s852_s4 = sshra.s32 %s565_s30, 4  ;;  %s853_s4 = int_to_ptr.hbm [resolvable:$true] %s852_s4 }
  0x34   : > { %v376_v9 = vld [vmem:[#allocation7 + $0x3c0] sm:$0xff]  ;;  %385 = vmatpush.msra.mxu0 %v312_v8  ;;  %v377_v12 = vld [vmem:[#allocation7 + $0x3c8] sm:$0xff]  ;;  %425 = vmatpush.msra.mxu2 %v313_v10  ;;  %v382_v8 = vld [vmem:[#allocation7 + $0x3f0] sm:$0xff]  ;;  %s854_s5 = scalar_lea.hbm %s853_s4, 32  ;;  %s858_s17 = scalar_lea.hbm %s1097_s3, 64 }
  0x35   : > { %v308_v13 = vld [vmem:[#allocation7 + $0x1a0] sm:$0xff]  ;;  %405 = vmatpush.msra.mxu1 %v376_v9  ;;  %v309_v15 = vld [vmem:[#allocation7 + $0x1a8] sm:$0xff]  ;;  %225 = vadd.xlane.f32.xlu0 %v224_v11  ;;  %v319_v9 = vld [vmem:[#allocation7 + $0x1f8] sm:$0xff]  ;;  %v914_v11 = vmov 256.0   ;;  %p855_p1 = scmp.ne.s32.totalorder %s853_s4, %s854_s5  ;;  %p859_p9 = scmp.lt.s32.totalorder %s853_s4, %s1097_s3 }
  0x36   : > { %v372_v14 = vld [vmem:[#allocation7 + $0x3a0] sm:$0xff]  ;;  %v373_v16 = vld [vmem:[#allocation7 + $0x3a8] sm:$0xff]  ;;  %445 = vmatpush.msra.mxu3 %v377_v12  ;;  %386 = vmatpush.msra.mxu0 %v308_v13  ;;  %v383_v10 = vld [vmem:[#allocation7 + $0x3f8] sm:$0xff]  ;;  %744 = vrcp.f32 %v914_v11  ;;  %p860_p10 = scmp.lt.s32.totalorder %s858_s17, %s854_s5 }
  0x37   : > { %v304_v17 = vld [vmem:[#allocation7 + $0x180] sm:$0xff]  ;;  %406 = vmatpush.msra.mxu1 %v372_v14  ;;  %v305_v19 = vld [vmem:[#allocation7 + $0x188] sm:$0xff]  ;;  %426 = vmatpush.msra.mxu2 %v309_v15  ;;  %v314_v12 = vld [vmem:[#allocation7 + $0x1d0] sm:$0xff]  ;;  %p856_p4 = pnand %p855_p1, %p1004_p5 }
  0x38   : > { %v368_v18 = vld [vmem:[#allocation7 + $0x380] sm:$0xff]  ;;  %v369_v20 = vld [vmem:[#allocation7 + $0x388] sm:$0xff]  ;;  %446 = vmatpush.msra.mxu3 %v373_v16  ;;  %387 = vmatpush.msra.mxu0 %v304_v17  ;;  %v378_v13 = vld [vmem:[#allocation7 + $0x3d0] sm:$0xff]  ;;  %p861_p2 = por %p860_p10, %p859_p9 }
  0x39   : > { %v300_v21 = vld [vmem:[#allocation7 + $0x160] sm:$0xff]  ;;  %407 = vmatpush.msra.mxu1 %v368_v18  ;;  %v301_v23 = vld [vmem:[#allocation7 + $0x168] sm:$0xff]  ;;  %427 = vmatpush.msra.mxu2 %v305_v19  ;;  %v315_v14 = vld [vmem:[#allocation7 + $0x1d8] sm:$0xff]  ;;  %p857_p8 = pneg %p856_p4 }
  0x3a   : > { %v364_v22 = vld [vmem:[#allocation7 + $0x360] sm:$0xff]  ;;  %v365_v24 = vld [vmem:[#allocation7 + $0x368] sm:$0xff]  ;;  %447 = vmatpush.msra.mxu3 %v369_v20  ;;  %388 = vmatpush.msra.mxu0 %v300_v21  ;;  %v379_v15 = vld [vmem:[#allocation7 + $0x3d8] sm:$0xff] }
  0x3b   : > { %v296_v25 = vld [vmem:[#allocation7 + $0x140] sm:$0xff]  ;;  %408 = vmatpush.msra.mxu1 %v364_v22  ;;  %v297_v27 = vld [vmem:[#allocation7 + $0x148] sm:$0xff]  ;;  %428 = vmatpush.msra.mxu2 %v301_v23  ;;  %v310_v16 = vld [vmem:[#allocation7 + $0x1b0] sm:$0xff]  ;;  %p862_p11 = pnand %p861_p2, %p857_p8 }
  0x3c   : > { %v360_v26 = vld [vmem:[#allocation7 + $0x340] sm:$0xff]  ;;  %v361_v28 = vld [vmem:[#allocation7 + $0x348] sm:$0xff]  ;;  %448 = vmatpush.msra.mxu3 %v365_v24  ;;  %389 = vmatpush.msra.mxu0 %v296_v25  ;;  %v374_v17 = vld [vmem:[#allocation7 + $0x3b0] sm:$0xff]  ;;  %v1051_v24 = vpop.eup %744 }
  0x3d   : > { %v292_v29 = vld [vmem:[#allocation7 + $0x120] sm:$0xff]  ;;  %409 = vmatpush.msra.mxu1 %v360_v26  ;;  %v293_v31 = vld [vmem:[#allocation7 + $0x128] sm:$0xff]  ;;  %429 = vmatpush.msra.mxu2 %v297_v27  ;;  %v311_v18 = vld [vmem:[#allocation7 + $0x1b8] sm:$0xff]  ;;  %vm232_vm0 = vweird.f32 %v1051_v24 }
  0x3e   : > { %v356_v30 = vld [vmem:[#allocation7 + $0x320] sm:$0xff]  ;;  %v357_v32 = vld [vmem:[#allocation7 + $0x328] sm:$0xff]  ;;  %449 = vmatpush.msra.mxu3 %v361_v28  ;;  %390 = vmatpush.msra.mxu0 %v292_v29  ;;  %v375_v19 = vld [vmem:[#allocation7 + $0x3b8] sm:$0xff] }
  0x3f   : > { %v288_v33 = vld [vmem:[#allocation7 + $0x100] sm:$0xff]  ;;  %410 = vmatpush.msra.mxu1 %v356_v30  ;;  %v289_v35 = vld [vmem:[#allocation7 + $0x108] sm:$0xff]  ;;  %430 = vmatpush.msra.mxu2 %v293_v31  ;;  %v306_v20 = vld [vmem:[#allocation7 + $0x190] sm:$0xff] }
  0x40   : > { %v352_v34 = vld [vmem:[#allocation7 + $0x300] sm:$0xff]  ;;  %v353_v36 = vld [vmem:[#allocation7 + $0x308] sm:$0xff]  ;;  %450 = vmatpush.msra.mxu3 %v357_v32  ;;  %391 = vmatpush.msra.mxu0 %v288_v33  ;;  %v370_v21 = vld [vmem:[#allocation7 + $0x390] sm:$0xff]  ;;  %v228_v32 = vmul.f32 256.0, %v1051_v24 }
  0x41   : > { %v284_v37 = vld [vmem:[#allocation7 + $0xe0] sm:$0xff]  ;;  %411 = vmatpush.msra.mxu1 %v352_v34  ;;  %v285_v39 = vld [vmem:[#allocation7 + $0xe8] sm:$0xff]  ;;  %431 = vmatpush.msra.mxu2 %v289_v35  ;;  %v307_v22 = vld [vmem:[#allocation7 + $0x198] sm:$0xff] }
  0x42   : > { %v348_v38 = vld [vmem:[#allocation7 + $0x2e0] sm:$0xff]  ;;  %v349_v40 = vld [vmem:[#allocation7 + $0x2e8] sm:$0xff]  ;;  %451 = vmatpush.msra.mxu3 %v353_v36  ;;  %392 = vmatpush.msra.mxu0 %v284_v37  ;;  %v371_v23 = vld [vmem:[#allocation7 + $0x398] sm:$0xff] }
  0x43   : > { %v280_v41 = vld [vmem:[#allocation7 + $0xc0] sm:$0xff]  ;;  %412 = vmatpush.msra.mxu1 %v348_v38  ;;  %v281_v43 = vld [vmem:[#allocation7 + $0xc8] sm:$0xff]  ;;  %432 = vmatpush.msra.mxu2 %v285_v39  ;;  %v302_v25 = vld [vmem:[#allocation7 + $0x170] sm:$0xff] }
  0x44   : > { %v344_v42 = vld [vmem:[#allocation7 + $0x2c0] sm:$0xff]  ;;  %v345_v44 = vld [vmem:[#allocation7 + $0x2c8] sm:$0xff]  ;;  %452 = vmatpush.msra.mxu3 %v349_v40  ;;  %393 = vmatpush.msra.mxu0 %v280_v41  ;;  %v366_v26 = vld [vmem:[#allocation7 + $0x370] sm:$0xff]  ;;  %v229_v41 = vsub.f32 1.0, %v228_v32 }
  0x45   : > { %v276_v45 = vld [vmem:[#allocation7 + $0xa0] sm:$0xff]  ;;  %413 = vmatpush.msra.mxu1 %v344_v42  ;;  %v277_v47 = vld [vmem:[#allocation7 + $0xa8] sm:$0xff]  ;;  %433 = vmatpush.msra.mxu2 %v281_v43  ;;  %v303_v27 = vld [vmem:[#allocation7 + $0x178] sm:$0xff] }
  0x46   : > { %v340_v46 = vld [vmem:[#allocation7 + $0x2a0] sm:$0xff]  ;;  %v341_v48 = vld [vmem:[#allocation7 + $0x2a8] sm:$0xff]  ;;  %453 = vmatpush.msra.mxu3 %v345_v44  ;;  %394 = vmatpush.msra.mxu0 %v276_v45  ;;  %v367_v28 = vld [vmem:[#allocation7 + $0x378] sm:$0xff] }
  0x47   : > { %v272_v49 = vld [vmem:[#allocation7 + $0x80] sm:$0xff]  ;;  %414 = vmatpush.msra.mxu1 %v340_v46  ;;  %v273_v51 = vld [vmem:[#allocation7 + $0x88] sm:$0xff]  ;;  %434 = vmatpush.msra.mxu2 %v277_v47  ;;  %v298_v29 = vld [vmem:[#allocation7 + $0x150] sm:$0xff] }
  0x48   : > { %v336_v50 = vld [vmem:[#allocation7 + $0x280] sm:$0xff]  ;;  %v337_v52 = vld [vmem:[#allocation7 + $0x288] sm:$0xff]  ;;  %454 = vmatpush.msra.mxu3 %v341_v48  ;;  %395 = vmatpush.msra.mxu0 %v272_v49  ;;  %v362_v30 = vld [vmem:[#allocation7 + $0x350] sm:$0xff] }
  0x49   : > { %v268_v53 = vld [vmem:[#allocation7 + $0x60] sm:$0xff]  ;;  %415 = vmatpush.msra.mxu1 %v336_v50  ;;  %v269_v55 = vld [vmem:[#allocation7 + $0x68] sm:$0xff]  ;;  %435 = vmatpush.msra.mxu2 %v273_v51  ;;  %v299_v31 = vld [vmem:[#allocation7 + $0x158] sm:$0xff]  ;;  %v230_v50 = vmul.f32 %v1051_v24, %v229_v41 }
  0x4a   : > { %v332_v54 = vld [vmem:[#allocation7 + $0x260] sm:$0xff]  ;;  %v333_v56 = vld [vmem:[#allocation7 + $0x268] sm:$0xff]  ;;  %455 = vmatpush.msra.mxu3 %v337_v52  ;;  %396 = vmatpush.msra.mxu0 %v268_v53  ;;  %v363_v33 = vld [vmem:[#allocation7 + $0x358] sm:$0xff] }
  0x4b   : > { %v264_v57 = vld [vmem:[#allocation7 + $0x40] sm:$0xff]  ;;  %416 = vmatpush.msra.mxu1 %v332_v54  ;;  %v265_v59 = vld [vmem:[#allocation7 + $0x48] sm:$0xff]  ;;  %436 = vmatpush.msra.mxu2 %v269_v55  ;;  %v294_v34 = vld [vmem:[#allocation7 + $0x130] sm:$0xff] }
  0x4c   : > { %v328_v58 = vld [vmem:[#allocation7 + $0x240] sm:$0xff]  ;;  %v329_v60 = vld [vmem:[#allocation7 + $0x248] sm:$0xff]  ;;  %456 = vmatpush.msra.mxu3 %v333_v56  ;;  %397 = vmatpush.msra.mxu0 %v264_v57  ;;  %v358_v35 = vld [vmem:[#allocation7 + $0x330] sm:$0xff] }
  0x4d   : > { %417 = vmatpush.msra.mxu1 %v328_v58  ;;  %437 = vmatpush.msra.mxu2 %v265_v59  ;;  %v260_v61 = vld [vmem:[#allocation7 + $0x20] sm:$0xff]  ;;  %v261_v63 = vld [vmem:[#allocation7 + $0x28] sm:$0xff]  ;;  %v295_v36 = vld [vmem:[#allocation7 + $0x138] sm:$0xff] }
  0x4e   : > { %457 = vmatpush.msra.mxu3 %v329_v60  ;;  %v324_v62 = vld [vmem:[#allocation7 + $0x220] sm:$0xff]  ;;  %398 = vmatpush.msra.mxu0 %v260_v61  ;;  %v325_v2 = vld [vmem:[#allocation7 + $0x228] sm:$0xff]  ;;  %v359_v37 = vld [vmem:[#allocation7 + $0x338] sm:$0xff]  ;;  %v231_v60 = vadd.f32 %v1051_v24, %v230_v50 }
  0x4f   : > { %418 = vmatpush.msra.mxu1 %v324_v62  ;;  %438 = vmatpush.msra.mxu2 %v261_v63  ;;  %v256_v3 = vld [vmem:[#allocation7] sm:$0xff]  ;;  %v257_v5 = vld [vmem:[#allocation7 + $0x8] sm:$0xff]  ;;  %v290_v38 = vld [vmem:[#allocation7 + $0x110] sm:$0xff] }
  0x50   : > { %458 = vmatpush.msra.mxu3 %v325_v2  ;;  %v320_v4 = vld [vmem:[#allocation7 + $0x200] sm:$0xff]  ;;  %399 = vmatpush.msra.mxu0 %v256_v3  ;;  %v321_v6 = vld [vmem:[#allocation7 + $0x208] sm:$0xff]  ;;  %v354_v39 = vld [vmem:[#allocation7 + $0x310] sm:$0xff] }
  0x51   : > { %419 = vmatpush.msra.mxu1 %v320_v4  ;;  %439 = vmatpush.msra.mxu2 %v257_v5  ;;  %v291_v40 = vld [vmem:[#allocation7 + $0x118] sm:$0xff]  ;;  %v286_v43 = vld [vmem:[#allocation7 + $0xf0] sm:$0xff]  ;;  %v233_v5 = vsel %vm232_vm0, %v1051_v24, %v231_v60 }
  0x52   : > { %459 = vmatpush.msra.mxu3 %v321_v6  ;;  %464 = vmatpush.msrb.mxu0 %v318_v7  ;;  %v355_v42 = vld [vmem:[#allocation7 + $0x318] sm:$0xff]  ;;  %v350_v44 = vld [vmem:[#allocation7 + $0x2f0] sm:$0xff] }
  0x53   : > { %484 = vmatpush.msrb.mxu1 %v382_v8  ;;  %504 = vmatpush.msrb.mxu2 %v319_v9  ;;  %v287_v45 = vld [vmem:[#allocation7 + $0xf8] sm:$0xff]  ;;  %v282_v47 = vld [vmem:[#allocation7 + $0xd0] sm:$0xff] }
  0x54   : > { %524 = vmatpush.msrb.mxu3 %v383_v10  ;;  %465 = vmatpush.msrb.mxu0 %v314_v12  ;;  %v351_v46 = vld [vmem:[#allocation7 + $0x2f8] sm:$0xff]  ;;  %v346_v48 = vld [vmem:[#allocation7 + $0x2d0] sm:$0xff] }
  0x55   : > { %485 = vmatpush.msrb.mxu1 %v378_v13  ;;  %505 = vmatpush.msrb.mxu2 %v315_v14  ;;  %v283_v49 = vld [vmem:[#allocation7 + $0xd8] sm:$0xff]  ;;  %v278_v52 = vld [vmem:[#allocation7 + $0xb0] sm:$0xff] }
  0x56   : > { %525 = vmatpush.msrb.mxu3 %v379_v15  ;;  %466 = vmatpush.msrb.mxu0 %v310_v16  ;;  %v347_v51 = vld [vmem:[#allocation7 + $0x2d8] sm:$0xff]  ;;  %v342_v53 = vld [vmem:[#allocation7 + $0x2b0] sm:$0xff] }
  0x57   : > { %486 = vmatpush.msrb.mxu1 %v374_v17  ;;  %506 = vmatpush.msrb.mxu2 %v311_v18  ;;  %v279_v54 = vld [vmem:[#allocation7 + $0xb8] sm:$0xff]  ;;  %v274_v56 = vld [vmem:[#allocation7 + $0x90] sm:$0xff] }
  0x58   : > { %526 = vmatpush.msrb.mxu3 %v375_v19  ;;  %467 = vmatpush.msrb.mxu0 %v306_v20  ;;  %v343_v55 = vld [vmem:[#allocation7 + $0x2b8] sm:$0xff]  ;;  %v338_v57 = vld [vmem:[#allocation7 + $0x290] sm:$0xff] }
  0x59   : > { %487 = vmatpush.msrb.mxu1 %v370_v21  ;;  %507 = vmatpush.msrb.mxu2 %v307_v22  ;;  %v275_v58 = vld [vmem:[#allocation7 + $0x98] sm:$0xff]  ;;  %v270_v61 = vld [vmem:[#allocation7 + $0x70] sm:$0xff] }
  0x5a   : > { %527 = vmatpush.msrb.mxu3 %v371_v23  ;;  %468 = vmatpush.msrb.mxu0 %v302_v25  ;;  %v339_v59 = vld [vmem:[#allocation7 + $0x298] sm:$0xff]  ;;  %v334_v62 = vld [vmem:[#allocation7 + $0x270] sm:$0xff] }
  0x5b   : > { %488 = vmatpush.msrb.mxu1 %v366_v26  ;;  %508 = vmatpush.msrb.mxu2 %v303_v27  ;;  %v271_v63 = vld [vmem:[#allocation7 + $0x78] sm:$0xff]  ;;  %v266_v3 = vld [vmem:[#allocation7 + $0x50] sm:$0xff] }
  0x5c   : > { %528 = vmatpush.msrb.mxu3 %v367_v28  ;;  %469 = vmatpush.msrb.mxu0 %v298_v29  ;;  %v335_v2 = vld [vmem:[#allocation7 + $0x278] sm:$0xff]  ;;  %v330_v4 = vld [vmem:[#allocation7 + $0x250] sm:$0xff] }
  0x5d   : > { %489 = vmatpush.msrb.mxu1 %v362_v30  ;;  %509 = vmatpush.msrb.mxu2 %v299_v31  ;;  %v267_v6 = vld [vmem:[#allocation7 + $0x58] sm:$0xff]  ;;  %v262_v8 = vld [vmem:[#allocation7 + $0x30] sm:$0xff] }
  0x5e   : > { %529 = vmatpush.msrb.mxu3 %v363_v33  ;;  %470 = vmatpush.msrb.mxu0 %v294_v34  ;;  %v331_v7 = vld [vmem:[#allocation7 + $0x258] sm:$0xff]  ;;  %v326_v9 = vld [vmem:[#allocation7 + $0x230] sm:$0xff] }
  0x5f   : > { %490 = vmatpush.msrb.mxu1 %v358_v35  ;;  %510 = vmatpush.msrb.mxu2 %v295_v36  ;;  %v263_v10 = vld [vmem:[#allocation7 + $0x38] sm:$0xff]  ;;  %v258_v13 = vld [vmem:[#allocation7 + $0x10] sm:$0xff] }
  0x60   : > { %530 = vmatpush.msrb.mxu3 %v359_v37  ;;  %471 = vmatpush.msrb.mxu0 %v290_v38  ;;  %v327_v11 = vld [vmem:[#allocation7 + $0x238] sm:$0xff]  ;;  %v322_v14 = vld [vmem:[#allocation7 + $0x210] sm:$0xff] }
  0x61   : > { %491 = vmatpush.msrb.mxu1 %v354_v39  ;;  %511 = vmatpush.msrb.mxu2 %v291_v40  ;;  %v259_v16 = vld [vmem:[#allocation7 + $0x18] sm:$0xff] }
  0x62   : > { %531 = vmatpush.msrb.mxu3 %v355_v42  ;;  %472 = vmatpush.msrb.mxu0 %v286_v43  ;;  %v323_v17 = vld [vmem:[#allocation7 + $0x218] sm:$0xff] }
  0x63   : > { %492 = vmatpush.msrb.mxu1 %v350_v44  ;;  %512 = vmatpush.msrb.mxu2 %v287_v45  ;;  %v248_v24 = vld [vmem:[#allocation5] sm:$0x3] }
  0x64   : > { %532 = vmatpush.msrb.mxu3 %v351_v46  ;;  %473 = vmatpush.msrb.mxu0 %v282_v47  ;;  %v250_v26 = vperm.slane %v248_v24, 0  ;;  %v251_v27 = vperm.slane %v248_v24, 1 }
  0x65   : > { %493 = vmatpush.msrb.mxu1 %v346_v48  ;;  %513 = vmatpush.msrb.mxu2 %v283_v49 }
  0x66   : > { %533 = vmatpush.msrb.mxu3 %v347_v51  ;;  %474 = vmatpush.msrb.mxu0 %v278_v52 }
  0x67   : > { %494 = vmatpush.msrb.mxu1 %v342_v53  ;;  %514 = vmatpush.msrb.mxu2 %v279_v54 }
  0x68   : > { %534 = vmatpush.msrb.mxu3 %v343_v55  ;;  %475 = vmatpush.msrb.mxu0 %v274_v56 }
  0x69   : > { %495 = vmatpush.msrb.mxu1 %v338_v57  ;;  %515 = vmatpush.msrb.mxu2 %v275_v58 }
  0x6a   : > { %535 = vmatpush.msrb.mxu3 %v339_v59  ;;  %476 = vmatpush.msrb.mxu0 %v270_v61 }
  0x6b   : > { %496 = vmatpush.msrb.mxu1 %v334_v62  ;;  %516 = vmatpush.msrb.mxu2 %v271_v63 }
  0x6c   : > { %536 = vmatpush.msrb.mxu3 %v335_v2  ;;  %477 = vmatpush.msrb.mxu0 %v266_v3 }
  0x6d   : > { %497 = vmatpush.msrb.mxu1 %v330_v4  ;;  %517 = vmatpush.msrb.mxu2 %v267_v6 }
  0x6e   : > { %537 = vmatpush.msrb.mxu3 %v331_v7  ;;  %478 = vmatpush.msrb.mxu0 %v262_v8 }
  0x6f   : > { %498 = vmatpush.msrb.mxu1 %v326_v9  ;;  %518 = vmatpush.msrb.mxu2 %v263_v10 }
  0x70   : > { %538 = vmatpush.msrb.mxu3 %v327_v11  ;;  %479 = vmatpush.msrb.mxu0 %v258_v13 }
  0x71   : > { %499 = vmatpush.msrb.mxu1 %v322_v14  ;;  %519 = vmatpush.msrb.mxu2 %v259_v16 }
  0x72   : > { %539 = vmatpush.msrb.mxu3 %v323_v17 }
  0xa8   : > { %v226_v12 = vpop.xlane.xlu0 %225 }
  0xa9   : > { %v234_v15 = vmul.f32 %v233_v5, %v226_v12 }
  0xab   : > { %v235_v18 = vadd.f32 1e-06, %v234_v15 }
  0xad   : > { %746 = vrsqrt.f32 %v235_v18  ;;  %vm242_vm2 = vweird.f32 %v235_v18 }
  0xb3   : > { %v747_v19 = vpop.eup %746 }
  0xb4   : > { %v237_v20 = vmul.f32 %v747_v19, %v235_v18  ;;  %vm243_vm1 = vweird.f32 %v747_v19 }
  0xb5   : > { %vm244_vm3 = vmor %vm242_vm2, %vm243_vm1 }
  0xb6   : > { %v238_v21 = vmul.f32 %v747_v19, %v237_v20 }
  0xb8   : > { %v239_v22 = vmul.f32 0.5, %v238_v21 }
  0xba   : > { %v240_v23 = vsub.f32 1.5, %v239_v22 }
  0xbc   : > { %v241_v25 = vmul.f32 %v747_v19, %v240_v23 }
  0xbe   : > { %v245_v28 = vsel %vm244_vm3, %v747_v19, %v241_v25 }
  0xbf   : > { %v246_v29 = vmul.f32 %v245_v28, %v1043_v0  ;;  %v247_v30 = vmul.f32 %v245_v28, %v1045_v1 }
  0xc1   : > { %v254_v31 = vmul.f32 %v250_v26, %v246_v29  ;;  %v255_v32 = vmul.f32 %v251_v27, %v247_v30 }
  0xc3   : > { %400 = vmatmul.f32.vlgmr.msra.gmra.mxu0 %v254_v31  ;;  %420 = vmatmul.f32.vlgmr.msra.gmra.mxu1 %v255_v32 }
  0xc4   : > { %440 = vmatmul.f32.vlgmr.msra.gmra.mxu2 %v254_v31  ;;  %460 = vmatmul.f32.vlgmr.msra.gmra.mxu3 %v255_v32 }
  0xcb   : > { %480 = vmatmul.f32.vlgmr.msrb.gmra.mxu0 %v254_v31  ;;  %500 = vmatmul.f32.vlgmr.msrb.gmra.mxu1 %v255_v32 }
  0xcc   : > { %520 = vmatmul.f32.vlgmr.msrb.gmra.mxu2 %v254_v31  ;;  %540 = vmatmul.f32.vlgmr.msrb.gmra.mxu3 %v255_v32 }
 0x140   : > { %v401_v33 = vpop.f32.mrf.mxu0  ;;  %v421_v34 = vpop.f32.mrf.mxu1 }
 0x141   : > { %v422_v35 = vadd.f32 %v421_v34, %v401_v33 }
 0x143   : > { %544 = vst [vmem:[%s219_s23] sm:$0xff] %v422_v35 }
 0x147   : > { %v441_v0 = vpop.f32.mrf.mxu2  ;;  %v461_v36 = vpop.f32.mrf.mxu3 }
 0x148   : > { %v462_v1 = vadd.f32 %v461_v36, %v441_v0  ;;  %v481_v37 = vpop.f32.mrf.mxu0  ;;  %v501_v38 = vpop.f32.mrf.mxu1 }
 0x149   : > { %v502_v39 = vadd.f32 %v501_v38, %v481_v37 }
 0x14a   : > { %545 = vst [vmem:[%s219_s23 + $0x8] sm:$0xff] %v462_v1 }
 0x14b   : > { %546 = vst [vmem:[%s219_s23 + $0x10] sm:$0xff] %v502_v39 }
 0x14f   : > { %v521_v40 = vpop.f32.mrf.mxu2  ;;  %v541_v41 = vpop.f32.mrf.mxu3 }
 0x150   : > { %v542_v42 = vadd.f32 %v541_v41, %v521_v40 }
 0x152   : > { %547 = vst [vmem:[%s219_s23 + $0x18] sm:$0xff] %v542_v42 }
 0x153   : > { %865 = shalt.err (!%p862_p11)
}
 0x154   : > { %684 = dma.vmem_to_hbm [thread:$0]  (%p1004_p5), %s563_s29, 512, %s565_s30, %s549_s16  }
 0x155 PF: > { %s576_s11 = sand.u32 1, %s896_s12   ;;  %p1103_p12 = scmp.ge.s32.totalorder %s908_s15, 2 }
 0x156   : > { %s577_s22 = scalar_lea.sflag [#allocation4], %s576_s11 }
 0x157   : > { %p698_p13 = pnand %p1103_p12, %p970_p6 }
 0x159   : > { %p699_p0 = pneg %p698_p13 }
 0x15b   : > { %891 = dma.done.wait (%p699_p0), %s577_s22, 512  }
 0x15c   : > { %893 = vsyncadd (%p699_p0), %s577_s22, 4294966784  ;;  %p17_p3 = scmp.ge.s32.totalorder %s991_s6, 4   ;;  %s1104_s12 = smov %s900_s13 }
 0x15d   : > { %s1105_s13 = smov %s904_s14  ;;  %s1106_s14 = smov %s1000_s9 }
 0x15e   : > { %s1107_s15 = smov %s991_s6  ;;  %19 = sbr.rel (!%p17_p3) target bundleno = 6 (0x6), region = 85 }
 0x163   :  { %583 = vsyncpa [#allocation3], 1 }
 0x164   :  { %585 = vsyncpa [#allocation3 + $0x1], 1 }
 0x165   :  { %586 = vsyncpa [#allocation6], 1 }
 0x166   :  { %587 = vsyncpa [#allocation4], 1 }
 0x167   :  { %589 = vsyncpa [#allocation4 + $0x1], 1 }

</bundles_post_ra>
